<compile_context>
chip_gen: v5e
topology: v5e:2x2
jax: 0.10.0
libtpu: 0.0.40
codegen_flags: <defaults>
</compile_context>

<pallas_src>
import functools
import math

import jax
import jax.numpy as jnp
from jax.experimental import pallas as pl
from jax.experimental.pallas import tpu as pltpu


# ----------------------------------------------------------------------------
# In-kernel math helpers
# ----------------------------------------------------------------------------
def _erf_approx(z):
    # Abramowitz & Stegun 7.1.26 rational approximation, max abs error ~1.5e-7.
    # Only runs on the tiny (1, Cr) hidden activation, so cost is negligible.
    a1 = 0.254829592
    a2 = -0.284496736
    a3 = 1.421413741
    a4 = -1.453152027
    a5 = 1.061405429
    p = 0.3275911
    sign = jnp.where(z >= 0.0, 1.0, -1.0)
    az = jnp.abs(z)
    t = 1.0 / (1.0 + p * az)
    poly = ((((a5 * t + a4) * t + a3) * t + a2) * t + a1) * t
    return sign * (1.0 - poly * jnp.exp(-az * az))


def _gelu_exact(x):
    # PyTorch nn.GELU() default = exact erf-based GELU.
    return 0.5 * x * (1.0 + _erf_approx(x * (1.0 / math.sqrt(2.0))))


def _se_gate(pooled, w1t, b1, w2, b2):
    """Squeeze-excite gate on the VPU (no M=1 MXU matmuls, no relayouts).

    pooled: (C, 1)   w1t: (C, Cr)   b1: (1, Cr)   w2: (C, Cr)   b2: (C, 1)
    returns y: (C, 1) in f32.
    """
    h = jnp.sum(pooled * w1t, axis=0, keepdims=True) + b1      # (1, Cr)
    h = _gelu_exact(h)
    y = jnp.sum(h * w2, axis=-1, keepdims=True) + b2           # (C, 1)
    return jax.nn.sigmoid(y)


# ----------------------------------------------------------------------------
# Fused single-pass kernel: grid=(N,), whole (1, C, HW) row resident in VMEM.
#   x_ref: (1, C, HW)   weights: full blocks   o_ref: (1, C, HW)
# ----------------------------------------------------------------------------
def _fused_kernel(x_ref, w1t_ref, b1_ref, w2_ref, b2_ref, o_ref, *, inv_hw):
    xr = x_ref[0]                                               # (C, HW)
    pooled = jnp.sum(xr.astype(jnp.float32), axis=-1, keepdims=True) * inv_hw
    y = _se_gate(pooled, w1t_ref[...], b1_ref[...], w2_ref[...], b2_ref[...])
    o_ref[0] = (xr * y).astype(o_ref.dtype)                    # broadcast over HW


# ----------------------------------------------------------------------------
# Fallback pass 1: global average pool tiled over HW, SE-MLP folded into the
# finalize branch.  The f32 output block (1, C, 1) doubles as the accumulator
# (it stays resident across the "arbitrary" HW axis).
#   x_ref: (1, C, T)   y_ref: (1, C, 1)
# ----------------------------------------------------------------------------
def _pool_mlp_kernel(x_ref, w1t_ref, b1_ref, w2_ref, b2_ref, y_ref, *,
                     hw, tile, inv_hw):
    t = pl.program_id(1)

    @pl.when(t == 0)
    def _init():
        y_ref[...] = jnp.zeros_like(y_ref)

    xt = x_ref[0].astype(jnp.float32)                           # (C, T), f32 pre-cast
    if hw % tile != 0:
        # Mask the ragged tail (boundary input blocks contain undefined data).
        cols = jax.lax.broadcasted_iota(jnp.int32, xt.shape, 1) + t * tile
        xt = jnp.where(cols < hw, xt, 0.0)
    y_ref[0] += jnp.sum(xt, axis=-1, keepdims=True)

    @pl.when(t == pl.num_programs(1) - 1)
    def _finalize():
        pooled = y_ref[0] * inv_hw                              # (C, 1)
        y_ref[0] = _se_gate(pooled, w1t_ref[...], b1_ref[...],
                            w2_ref[...], b2_ref[...])


# ----------------------------------------------------------------------------
# Fallback pass 2: pure scaling stream, tiled over (N, HW).
#   x_ref: (1, C, T)   y_ref: (1, C, 1) f32   o_ref: (1, C, T)
# (boundary output blocks are only partially written back by Pallas, so the
# ragged tail needs no explicit handling here.)
# ----------------------------------------------------------------------------
def _scale_kernel(x_ref, y_ref, o_ref):
    o_ref[...] = (x_ref[...] * y_ref[...]).astype(o_ref.dtype)


# ----------------------------------------------------------------------------
# Wrapper helpers
# ----------------------------------------------------------------------------
def _scoped_vmem_budget_bytes():
    """Conservative scoped-VMEM budget for the current TPU generation."""
    try:
        info = pltpu.get_tpu_info()
        phys = int(getattr(info, "vmem_capacity_bytes", 128 << 20))
    except Exception:
        phys = 128 << 20
    # v5e has the tightest default scoped limit (16 MiB); v7x has only
    # 64 MiB physical.  min(phys/4, 16 MiB) is safe on every generation.
    return min(phys // 4, 16 << 20)


def _pick_hw_tile(hw, c, itemsize, budget):
    """Lane-dense HW tile (multiple of 128) for the fallback streaming passes."""
    hw128 = pl.cdiv(hw, 128) * 128
    cap_bytes = max(budget // 6, c * itemsize * 128)   # in + out, double-buffered
    tile = max(128, (cap_bytes // (c * itemsize)) // 128 * 128)
    return int(min(tile, hw128))


def channel_attention(x, w1, b1, w2, b2, *, hw_tile=None):
    """FFN.ca of SPIN.

    x: (N, C, H, W);  w1: (Cr, C, 1, 1);  b1: (Cr,);  w2: (C, Cr, 1, 1); b2: (C,).
    `hw_tile` forces the 2-pass tiled fallback (testing / huge-HW override).
    """
    n, c, h, w = x.shape
    cr = w1.shape[0]
    hw = h * w
    itemsize = jnp.dtype(x.dtype).itemsize

    x_flat = x.reshape(n, c, hw)

    # Weight layouts chosen so the in-kernel SE-MLP needs no relayouts:
    w1t = w1.reshape(cr, c).astype(jnp.float32).T               # (C, Cr)
    b1c = b1.reshape(1, cr).astype(jnp.float32)                 # (1, Cr)
    w2m = w2.reshape(c, cr).astype(jnp.float32)                 # (C, Cr)
    b2c = b2.reshape(c, 1).astype(jnp.float32)                  # (C, 1)

    budget = _scoped_vmem_budget_bytes()
    row_bytes = c * hw * itemsize
    use_fused = (hw_tile is None) and (4 * row_bytes + (1 << 20) <= budget)

    if use_fused:
        # ---- Single fused pass: pool + SE-MLP + scale, grid=(N,) ------------
        out_flat = pl.pallas_call(
            functools.partial(_fused_kernel, inv_hw=1.0 / float(hw)),
            out_shape=jax.ShapeDtypeStruct((n, c, hw), x.dtype),
            grid_spec=pltpu.PrefetchScalarGridSpec(
                num_scalar_prefetch=0,
                grid=(n,),
                in_specs=[
                    pl.BlockSpec((1, c, hw), lambda i: (i, 0, 0)),
                    pl.BlockSpec((c, cr), lambda i: (0, 0)),
                    pl.BlockSpec((1, cr), lambda i: (0, 0)),
                    pl.BlockSpec((c, cr), lambda i: (0, 0)),
                    pl.BlockSpec((c, 1), lambda i: (0, 0)),
                ],
                out_specs=pl.BlockSpec((1, c, hw), lambda i: (i, 0, 0)),
            ),
            compiler_params=pltpu.CompilerParams(
                dimension_semantics=("parallel",)),
            cost_estimate=pl.CostEstimate(
                flops=int(2 * n * c * hw + 4 * n * c * cr),
                transcendentals=int(n * (c + cr)),
                bytes_accessed=int(2 * n * c * hw * itemsize)),
        )(x_flat, w1t, b1c, w2m, b2c)
        return out_flat.reshape(n, c, h, w)

    # ---- Fallback: 2-pass streaming structure for large HW rows -------------
    tile = hw_tile if hw_tile is not None else _pick_hw_tile(hw, c, itemsize, budget)
    num_tiles = pl.cdiv(hw, tile)

    # Pass 1: pooled means + SE-MLP gate, y: (N, C, 1) f32.
    y = pl.pallas_call(
        functools.partial(_pool_mlp_kernel, hw=hw, tile=tile,
                          inv_hw=1.0 / float(hw)),
        out_shape=jax.ShapeDtypeStruct((n, c, 1), jnp.float32),
        grid_spec=pltpu.PrefetchScalarGridSpec(
            num_scalar_prefetch=0,
            grid=(n, num_tiles),
            in_specs=[
                pl.BlockSpec((1, c, tile), lambda i, t: (i, 0, t)),
                pl.BlockSpec((c, cr), lambda i, t: (0, 0)),
                pl.BlockSpec((1, cr), lambda i, t: (0, 0)),
                pl.BlockSpec((c, cr), lambda i, t: (0, 0)),
                pl.BlockSpec((c, 1), lambda i, t: (0, 0)),
            ],
            out_specs=pl.BlockSpec((1, c, 1), lambda i, t: (i, 0, 0)),
        ),
        compiler_params=pltpu.CompilerParams(
            dimension_semantics=("parallel", "arbitrary")),
        cost_estimate=pl.CostEstimate(
            flops=int(n * c * hw + 4 * n * c * cr),
            transcendentals=int(n * (c + cr)),
            bytes_accessed=int(n * c * hw * itemsize + n * c * 4)),
    )(x_flat, w1t, b1c, w2m, b2c)

    # Pass 2: scale x by the per-(batch, channel) gate (f32 gate, no pre-cast).
    out_flat = pl.pallas_call(
        _scale_kernel,
        out_shape=jax.ShapeDtypeStruct((n, c, hw), x.dtype),
        grid_spec=pltpu.PrefetchScalarGridSpec(
            num_scalar_prefetch=0,
            grid=(n, num_tiles),
            in_specs=[
                pl.BlockSpec((1, c, tile), lambda i, t: (i, 0, t)),
                pl.BlockSpec((1, c, 1), lambda i, t: (i, 0, 0)),
            ],
            out_specs=pl.BlockSpec((1, c, tile), lambda i, t: (i, 0, t)),
        ),
        compiler_params=pltpu.CompilerParams(
            dimension_semantics=("parallel", "parallel")),
        cost_estimate=pl.CostEstimate(
            flops=int(n * c * hw),
            transcendentals=0,
            bytes_accessed=int(2 * n * c * hw * itemsize)),
    )(x_flat, y)

    return out_flat.reshape(n, c, h, w)


# ----------------------------------------------------------------------------
# Reference (plain JAX) for correctness check
# ----------------------------------------------------------------------------
def _reference(x, w1, b1, w2, b2):
    n, c, h, w = x.shape
    cr = w1.shape[0]
    pooled = jnp.mean(x, axis=(2, 3))                           # (N, C)
    h1 = pooled @ w1.reshape(cr, c).T + b1                      # (N, Cr)
    h1 = jax.nn.gelu(h1, approximate=False)                     # exact GELU
    y = h1 @ w2.reshape(c, cr).T + b2                           # (N, C)
    y = jax.nn.sigmoid(y)
    return x * y[:, :, None, None]


if __name__ == "__main__":
    # SPIN default dim=40, reduction 8 -> hidden=5; batch=2, spatial 24x24
    # (hw=576 is not a multiple of 128 -> exercises the ragged-tail handling).
    N, C, H, W = 2, 40, 24, 24
    R = 8
    CR = C // R

    key = jax.random.PRNGKey(0)
    kx, kw1, kb1, kw2, kb2 = jax.random.split(key, 5)

    x = jax.random.normal(kx, (N, C, H, W), dtype=jnp.float32)
    # Conv2d 1x1 weight shape: (out, in, 1, 1).
    w1 = 0.2 * jax.random.normal(kw1, (CR, C, 1, 1), dtype=jnp.float32)
    b1 = 0.1 * jax.random.normal(kb1, (CR,), dtype=jnp.float32)
    w2 = 0.2 * jax.random.normal(kw2, (C, CR, 1, 1), dtype=jnp.float32)
    b2 = 0.1 * jax.random.normal(kb2, (C,), dtype=jnp.float32)

    ref = _reference(x, w1, b1, w2, b2)

    # Default: fully fused single-pass kernel.
    out_fused = jax.block_until_ready(channel_attention(x, w1, b1, w2, b2))
    assert out_fused.shape == (N, C, H, W)
    assert jnp.allclose(out_fused, ref, atol=1e-5, rtol=1e-5)

    # Force the 2-pass tiled fallback (ragged tail: 576 = 4*128 + 64) to make
    # sure the large-HW path stays correct too.
    out_tiled = jax.block_until_ready(
        channel_attention(x, w1, b1, w2, b2, hw_tile=128))
    assert out_tiled.shape == (N, C, H, W)
    assert jnp.allclose(out_tiled, ref, atol=1e-5, rtol=1e-5)

    print("KERNEL_OK")
</pallas_src>

<mosaic_0001>
module attributes {stable_mosaic.version = 11 : i64} {
  func.func @_fused_kernel(%arg0: i32, %arg1: memref<1x40x576xf32, #tpu.memory_space<vmem>>, %arg2: memref<40x5xf32, #tpu.memory_space<vmem>>, %arg3: memref<1x5xf32, #tpu.memory_space<vmem>>, %arg4: memref<40x5xf32, #tpu.memory_space<vmem>>, %arg5: memref<40x1xf32, #tpu.memory_space<vmem>>, %arg6: memref<1x40x576xf32, #tpu.memory_space<vmem>>) attributes {dimension_semantics = [#tpu.dimension_semantics<parallel>], iteration_bounds = array<i64: 2>, scalar_prefetch = 0 : i64, scratch_operands = 0 : i64, tpu.core_type = #tpu.core_type<tc>, window_params = [{transform_indices = @transform_0, window_bounds = array<i64: 1, 40, 576>}, {pipeline_mode = #tpu.pipeline_mode<synchronous>, transform_indices = @transform_1, window_bounds = array<i64: 40, 5>}, {pipeline_mode = #tpu.pipeline_mode<synchronous>, transform_indices = @transform_2, window_bounds = array<i64: 1, 5>}, {pipeline_mode = #tpu.pipeline_mode<synchronous>, transform_indices = @transform_3, window_bounds = array<i64: 40, 5>}, {pipeline_mode = #tpu.pipeline_mode<synchronous>, transform_indices = @transform_4, window_bounds = array<i64: 40, 1>}, {transform_indices = @transform_5, window_bounds = array<i64: 1, 40, 576>}]} {
    %c0 = arith.constant 0 : index
    %c0_0 = arith.constant 0 : index
    %c0_1 = arith.constant 0 : index
    %0 = vector.load %arg1[%c0, %c0_0, %c0_1] : memref<1x40x576xf32, #tpu.memory_space<vmem>>, vector<1x40x576xf32>
    %1 = vector.shape_cast %0 : vector<1x40x576xf32> to vector<40x576xf32>
    %cst = arith.constant dense<0.000000e+00> : vector<40xf32>
    %2 = vector.multi_reduction <add>, %1, %cst [1] : vector<40x576xf32> to vector<40xf32>
    %3 = vector.shape_cast %2 : vector<40xf32> to vector<40x1xf32>
    %cst_2 = arith.constant 0.00173611112 : f32
    %4 = vector.broadcast %cst_2 : f32 to vector<40x1xf32>
    %5 = arith.mulf %3, %4 : vector<40x1xf32>
    %c0_3 = arith.constant 0 : index
    %c0_4 = arith.constant 0 : index
    %6 = vector.load %arg2[%c0_3, %c0_4] : memref<40x5xf32, #tpu.memory_space<vmem>>, vector<40x5xf32>
    %c0_5 = arith.constant 0 : index
    %c0_6 = arith.constant 0 : index
    %7 = vector.load %arg3[%c0_5, %c0_6] : memref<1x5xf32, #tpu.memory_space<vmem>>, vector<1x5xf32>
    %c0_7 = arith.constant 0 : index
    %c0_8 = arith.constant 0 : index
    %8 = vector.load %arg4[%c0_7, %c0_8] : memref<40x5xf32, #tpu.memory_space<vmem>>, vector<40x5xf32>
    %c0_9 = arith.constant 0 : index
    %c0_10 = arith.constant 0 : index
    %9 = vector.load %arg5[%c0_9, %c0_10] : memref<40x1xf32, #tpu.memory_space<vmem>>, vector<40x1xf32>
    %10 = vector.broadcast %5 : vector<40x1xf32> to vector<40x5xf32>
    %11 = arith.mulf %10, %6 : vector<40x5xf32>
    %cst_11 = arith.constant dense<0.000000e+00> : vector<5xf32>
    %12 = vector.multi_reduction <add>, %11, %cst_11 [0] : vector<40x5xf32> to vector<5xf32>
    %13 = vector.shape_cast %12 : vector<5xf32> to vector<1x5xf32>
    %14 = arith.addf %13, %7 : vector<1x5xf32>
    %cst_12 = arith.constant 5.000000e-01 : f32
    %15 = vector.broadcast %cst_12 : f32 to vector<1x5xf32>
    %16 = arith.mulf %15, %14 : vector<1x5xf32>
    %cst_13 = arith.constant 0.707106769 : f32
    %17 = vector.broadcast %cst_13 : f32 to vector<1x5xf32>
    %18 = arith.mulf %14, %17 : vector<1x5xf32>
    %cst_14 = arith.constant 0.000000e+00 : f32
    %19 = vector.broadcast %cst_14 : f32 to vector<1x5xf32>
    %20 = arith.cmpf oge, %18, %19 : vector<1x5xf32>
    %cst_15 = arith.constant 1.000000e+00 : f32
    %cst_16 = arith.constant -1.000000e+00 : f32
    %21 = vector.broadcast %cst_15 : f32 to vector<1x5xf32>
    %22 = vector.broadcast %cst_16 : f32 to vector<1x5xf32>
    %23 = arith.select %20, %21, %22 : vector<1x5xi1>, vector<1x5xf32>
    %24 = math.absf %18 : vector<1x5xf32>
    %cst_17 = arith.constant 0.327591091 : f32
    %25 = vector.broadcast %cst_17 : f32 to vector<1x5xf32>
    %26 = arith.mulf %25, %24 : vector<1x5xf32>
    %cst_18 = arith.constant 1.000000e+00 : f32
    %27 = vector.broadcast %cst_18 : f32 to vector<1x5xf32>
    %28 = arith.addf %27, %26 : vector<1x5xf32>
    %cst_19 = arith.constant 1.000000e+00 : f32
    %29 = vector.broadcast %cst_19 : f32 to vector<1x5xf32>
    %30 = arith.divf %29, %28 : vector<1x5xf32>
    %cst_20 = arith.constant 1.06140542 : f32
    %31 = vector.broadcast %cst_20 : f32 to vector<1x5xf32>
    %32 = arith.mulf %31, %30 : vector<1x5xf32>
    %cst_21 = arith.constant -1.45315206 : f32
    %33 = vector.broadcast %cst_21 : f32 to vector<1x5xf32>
    %34 = arith.addf %32, %33 : vector<1x5xf32>
    %35 = arith.mulf %34, %30 : vector<1x5xf32>
    %cst_22 = arith.constant 1.42141378 : f32
    %36 = vector.broadcast %cst_22 : f32 to vector<1x5xf32>
    %37 = arith.addf %35, %36 : vector<1x5xf32>
    %38 = arith.mulf %37, %30 : vector<1x5xf32>
    %cst_23 = arith.constant -0.284496725 : f32
    %39 = vector.broadcast %cst_23 : f32 to vector<1x5xf32>
    %40 = arith.addf %38, %39 : vector<1x5xf32>
    %41 = arith.mulf %40, %30 : vector<1x5xf32>
    %cst_24 = arith.constant 0.254829586 : f32
    %42 = vector.broadcast %cst_24 : f32 to vector<1x5xf32>
    %43 = arith.addf %41, %42 : vector<1x5xf32>
    %44 = arith.mulf %43, %30 : vector<1x5xf32>
    %cst_25 = arith.constant 0.000000e+00 : f32
    %45 = vector.broadcast %cst_25 : f32 to vector<1x5xf32>
    %46 = arith.subf %45, %24 : vector<1x5xf32>
    %47 = arith.mulf %46, %24 : vector<1x5xf32>
    %48 = math.exp %47 : vector<1x5xf32>
    %49 = arith.mulf %44, %48 : vector<1x5xf32>
    %cst_26 = arith.constant 1.000000e+00 : f32
    %50 = vector.broadcast %cst_26 : f32 to vector<1x5xf32>
    %51 = arith.subf %50, %49 : vector<1x5xf32>
    %52 = arith.mulf %23, %51 : vector<1x5xf32>
    %cst_27 = arith.constant 1.000000e+00 : f32
    %53 = vector.broadcast %cst_27 : f32 to vector<1x5xf32>
    %54 = arith.addf %53, %52 : vector<1x5xf32>
    %55 = arith.mulf %16, %54 : vector<1x5xf32>
    %56 = vector.broadcast %55 : vector<1x5xf32> to vector<40x5xf32>
    %57 = arith.mulf %56, %8 : vector<40x5xf32>
    %cst_28 = arith.constant dense<0.000000e+00> : vector<40xf32>
    %58 = vector.multi_reduction <add>, %57, %cst_28 [1] : vector<40x5xf32> to vector<40xf32>
    %59 = vector.shape_cast %58 : vector<40xf32> to vector<40x1xf32>
    %60 = arith.addf %59, %9 : vector<40x1xf32>
    %61 = arith.negf %60 : vector<40x1xf32>
    %62 = math.exp %61 : vector<40x1xf32>
    %cst_29 = arith.constant 1.000000e+00 : f32
    %63 = vector.broadcast %cst_29 : f32 to vector<40x1xf32>
    %64 = arith.addf %63, %62 : vector<40x1xf32>
    %65 = arith.divf %63, %64 : vector<40x1xf32>
    %66 = vector.broadcast %65 : vector<40x1xf32> to vector<40x576xf32>
    %67 = arith.mulf %1, %66 : vector<40x576xf32>
    %c0_30 = arith.constant 0 : index
    %c0_31 = arith.constant 0 : index
    %c0_32 = arith.constant 0 : index
    %68 = vector.load %arg6[%c0_30, %c0_31, %c0_32] : memref<1x40x576xf32, #tpu.memory_space<vmem>>, vector<1x40x576xf32>
    %69 = vector.shape_cast %68 : vector<1x40x576xf32> to vector<40x576xf32>
    %70 = vector.shape_cast %67 : vector<40x576xf32> to vector<1x40x576xf32>
    tpu.vector_store %arg6[%c0_30, %c0_31, %c0_32], %70 {strides = array<i32>} : memref<1x40x576xf32, #tpu.memory_space<vmem>>, vector<1x40x576xf32>,
    return
  }
  func.func @transform_0(%arg0: i32) -> (i32, i32, i32) {
    %c0_i32 = arith.constant 0 : i32
    %c0_i32_0 = arith.constant 0 : i32
    %c0_i32_1 = arith.constant 0 : i32
    return %arg0, %c0_i32, %c0_i32_0 : i32, i32, i32
  }
  func.func @transform_1(%arg0: i32) -> (i32, i32) {
    %c0_i32 = arith.constant 0 : i32
    %c0_i32_0 = arith.constant 0 : i32
    %c0_i32_1 = arith.constant 0 : i32
    return %c0_i32, %c0_i32_0 : i32, i32
  }
  func.func @transform_2(%arg0: i32) -> (i32, i32) {
    %c0_i32 = arith.constant 0 : i32
    %c0_i32_0 = arith.constant 0 : i32
    %c0_i32_1 = arith.constant 0 : i32
    return %c0_i32, %c0_i32_0 : i32, i32
  }
  func.func @transform_3(%arg0: i32) -> (i32, i32) {
    %c0_i32 = arith.constant 0 : i32
    %c0_i32_0 = arith.constant 0 : i32
    %c0_i32_1 = arith.constant 0 : i32
    return %c0_i32, %c0_i32_0 : i32, i32
  }
  func.func @transform_4(%arg0: i32) -> (i32, i32) {
    %c0_i32 = arith.constant 0 : i32
    %c0_i32_0 = arith.constant 0 : i32
    %c0_i32_1 = arith.constant 0 : i32
    return %c0_i32, %c0_i32_0 : i32, i32
  }
  func.func @transform_5(%arg0: i32) -> (i32, i32, i32) {
    %c0_i32 = arith.constant 0 : i32
    %c0_i32_0 = arith.constant 0 : i32
    %c0_i32_1 = arith.constant 0 : i32
    return %arg0, %c0_i32, %c0_i32_0 : i32, i32, i32
  }
}

</mosaic_0001>

<bundles_post_ra>
// kernel: tpu_custom_call.1
= control target key start
LH: loop header
LB: loop body
LE: loop exit
PB: predicated region body
PF: predicated region fallthrough
CT: control target
= control target key end

     0   :  { %10 = vsyncpa [#allocation3], 0  ;;  %s1265_s0 = inlined_call_operand.hbm [shape: f32[2,40,576], index: 0, kind: input, shape index: {}]   ;;  %s1266_s1 = inlined_call_operand.vmem [shape: f32[40,5], index: 1, kind: input, shape index: {}]   ;;  %s1267_s2 = inlined_call_operand.vmem [shape: f32[1,5], index: 2, kind: input, shape index: {}]   ;;  %s1268_s3 = inlined_call_operand.vmem [shape: f32[40,5], index: 3, kind: input, shape index: {}]   ;;  %s1269_s4 = inlined_call_operand.vmem [shape: f32[40,1], index: 4, kind: input, shape index: {}]   ;;  %s1270_s5 = inlined_call_operand.hbm [shape: f32[2,40,576], index: 5, kind: output, shape index: {}]  }
   0x1   :  { %12 = vsyncpa [#allocation3 + $0x1], 0 }
   0x2   :  { %13 = vsyncpa [#allocation4], 0 }
   0x3   :  { %15 = vsyncpa [#allocation4 + $0x1], 0  ;;  %s904_s18 = smov 0   ;;  %s906_s19 = smov 0  }
   0x4   :  { %s908_s20 = smov 0   ;;  %s910_s21 = smov 0  }
   0x5 LB: > { %s925_s22 = sadd.s32 4294967295, %s866_s21   ;;  %s674_s23 = sadd.s32 4294967294, %s866_s21   ;;  %s866_s21 = sphi %s910_s21, %s1278_s21   ;;  %s862_s20 = sphi %s908_s20, %s1277_s20   ;;  %s858_s19 = sphi %s906_s19, %s1276_s19   ;;  %s854_s18 = sphi %s904_s18, %s1275_s18  }
   0x6   : > { %s929_s24 = sadd.s32 1, %s866_s21   ;;  %s28_s25 = sadd.s32 1, %s862_s20 }
   0x7   : > { %s25_s26 = ssub.s32 %s866_s21, %s929_s24  ;;  %p35_p0 = scmp.ne.s32.totalorder %s862_s20, %s858_s19 }
   0x8   : > { %p26_p1 = scmp.eq.s32.totalorder %s25_s26, 0  ;;  %p36_p2 = scmp.eq.s32.totalorder %s866_s21, 0 }
   0x9   : > { %p41_p3 = scmp.ne.s32.totalorder %s858_s19, %s854_s18  ;;  %p42_p4 = scmp.eq.s32.totalorder %s925_s22, 0 }
   0xa   : > { %s941_s27 = scalar_select %p26_p1, %s862_s20, %s28_s25  }
   0xb   : > { %p37_p5 = por %p36_p2, %p35_p0  ;;  %p943_p6 = por %p42_p4, %p41_p3 }
   0xc   : > { %p149_p7 = scmp.eq.s32.totalorder %s925_s22, 1  ;;  %p155_p8 = scmp.eq.s32.totalorder %s674_s23, 1 }
   0xd   : > { %p676_p9 = scmp.ge.s32.totalorder %s866_s21, 2  ;;  %p703_p10 = scmp.lt.s32.totalorder %s866_s21, 2 }
   0xe   : > { %p950_p11 = por %p149_p7, %p35_p0  ;;  %p954_p12 = por %p155_p8, %p41_p3 }
   0xf   : > { %s187_s6 = sand.u32 1, %s862_s20   ;;  %s688_s7 = smul.u32 200, %s866_s21 }
  0x10   : > { %s687_s8 = smul.u32 200, %s187_s6  ;;  %p963_p13 = pnand %p703_p10, %p37_p5 }
  0x11   : > { %s196_s11 = scalar_lea.hbm %s1265_s0, %s688_s7  ;;  %s188_s16 = scalar_lea.sflag [#allocation3], %s187_s6 }
  0x12   : > { %s197_s13 = sshll.u32 %s196_s11, 4  ;;  %s191_s14 = scalar_lea.vmem [#allocation2], %s687_s8  ;;  %s198_s13 = int_to_ptr.hbm [resolvable:$true] %s197_s13 }
  0x13   : > { %s199_s15 = sshll.u32 %s191_s14, 4  ;;  %s770_s17 = sshra.s32 %s198_s13, 4  ;;  %s200_s15 = int_to_ptr.vmem [resolvable:$true] %s199_s15  ;;  %s771_s17 = int_to_ptr.hbm [resolvable:$true] %s770_s17 }
  0x14   : > { %s772_s23 = scalar_lea.hbm %s771_s17, 200  ;;  %p774_p1 = pneg %p963_p13 }
  0x15   : > { %p773_p0 = scmp.ne.s32.totalorder %s771_s17, %s772_s23  ;;  %s777_s7 = scalar_lea.hbm %s1265_s0, 400 }
  0x16   : > { %p778_p4 = scmp.lt.s32.totalorder %s771_s17, %s1265_s0  ;;  %p779_p5 = scmp.lt.s32.totalorder %s777_s7, %s772_s23 }
  0x17   : > { %p775_p2 = pnand %p774_p1, %p773_p0 }
  0x18   : > { %p780_p7 = por %p779_p5, %p778_p4 }
  0x19   : > { %p776_p3 = pneg %p775_p2 }
  0x1b   : > { %p781_p8 = pnand %p780_p7, %p776_p3 }
  0x1d   : > { %784 = shalt.err (!%p781_p8)
}
  0x1e   : > { %s868_s6 = smov 640   ;;  %s869_s8 = smov 40  }
  0x1f   : > { %698 = dma.hbm_to_vmem [thread:$0]  (!%p963_p13), %s198_s13, 3200, %s200_s15, %s188_s16, %s868_s6, %s868_s6, %s869_s8  }
  0x20   : > { %p678_p10 = scmp.ge.s32.totalorder %s866_s21, 1  ;;  %p207_p0 = scmp.lt.s32.totalorder %s866_s21, 3 }
  0x22   : > { %p208_p1 = pnand %p678_p10, %p207_p0 }
  0x23   : > { %s980_s11 = sand.u32 (!%p208_p1), 1, %s858_s19  }
  0x24   : > { %211 = sbr.rel (%p208_p1) target bundleno = 541 (0x21d), region = 40  ;;  %s214_s17 = scalar_lea.sflag (!%p208_p1), [#allocation3], %s980_s11 }
  0x25   : > { %s689_s14 = smul.u32 (!%p208_p1), 200, %s980_s11 }
  0x27   : > { %s986_s23 = scalar_lea.vmem (!%p208_p1), [#allocation2], %s689_s14 }
  0x29   : > { %845 = dma.done.wait (%p943_p6), %s214_s17, 3200  }
  0x2a   : > { %847 = vsyncadd (%p943_p6), %s214_s17, 4294964096  ;;  %v993_v0 = vld [vmem:[%s986_s23] sm:$0xff]  ;;  %v996_v1 = vld [vmem:[%s986_s23 + $0x8] sm:$0xff]  ;;  %vm273_vm0 = vcmask 523264   ;;  %vm332_vm1 = vcmask 39936   ;;  %s1179_s16 = scalar_lea.vmem [#allocation5], %s689_s14 }
  0x2b   : > { %v999_v2 = vld [vmem:[%s986_s23 + $0x10] sm:$0xff]  ;;  %v1002_v3 = vld [vmem:[%s986_s23 + $0x20] sm:$0xff]  ;;  %v270_v4 = vadd.f32 %v996_v1, %v993_v0  ;;  %v1010_v6 = vld [vmem:[%s986_s23 + $0x18] sm:$0xff]  ;;  %s690_s14 = smul.u32 200, %s925_s22  ;;  %s598_s22 = sshll.u32 %s1179_s16, 4  ;;  %s599_s22 = int_to_ptr.vmem [resolvable:$true] %s598_s22 }
  0x2c   : > { %v1007_v5 = vld [vmem:[%s986_s23 + $0x50] sm:$0xff]  ;;  %v1013_v7 = vld [vmem:[%s986_s23 + $0x58] sm:$0xff]  ;;  %v1016_v8 = vld [vmem:[%s986_s23 + $0x60] sm:$0xff]  ;;  %v274_v14 = vsel %vm273_vm0, %v1002_v3, 0.0  ;;  %s586_s10 = scalar_lea.sflag [#allocation4], %s980_s11  ;;  %s820_s28 = scalar_lea.hbm %s1270_s5, 400 }
  0x2d   : > { %v271_v9 = vadd.f32 %v270_v4, %v999_v2  ;;  %v1020_v10 = vld [vmem:[%s986_s23 + $0x70] sm:$0xff]  ;;  %v285_v11 = vadd.f32 %v1013_v7, %v1007_v5  ;;  %v1025_v12 = vld [vmem:[%s986_s23 + $0x28] sm:$0xff]  ;;  %v1036_v16 = vld [vmem:[%s986_s23 + $0x38] sm:$0xff]  ;;  %s597_s7 = scalar_lea.hbm %s1270_s5, %s690_s14 }
  0x2e   : > { %v1028_v13 = vld [vmem:[%s986_s23 + $0x30] sm:$0xff]  ;;  %v1033_v15 = vld [vmem:[%s986_s23 + $0x68] sm:$0xff]  ;;  %v1043_v20 = vld [vmem:[%s986_s23 + $0x78] sm:$0xff]  ;;  %v288_v23 = vsel %vm273_vm0, %v1020_v10, 0.0  ;;  %s600_s9 = sshll.u32 %s597_s7, 4  ;;  %s601_s9 = int_to_ptr.hbm [resolvable:$true] %s600_s9 }
  0x2f   : > { %v278_v17 = vadd.f32 %v1028_v13, %v1025_v12  ;;  %v272_v18 = vadd.f32 %v271_v9, %v1010_v6  ;;  %v286_v19 = vadd.f32 %v285_v11, %v1016_v8  ;;  %v1046_v21 = vld [vmem:[%s986_s23 + $0x80] sm:$0xff]  ;;  %v1049_v22 = vld [vmem:[%s986_s23 + $0x88] sm:$0xff]  ;;  %v1070_v32 = vld [vmem:[%s986_s23 + $0xb0] sm:$0xff]  ;;  %s814_s6 = sshra.s32 %s601_s9, 4  ;;  %s815_s6 = int_to_ptr.hbm [resolvable:$true] %s814_s6 }
  0x30   : > { %v1054_v24 = vld [vmem:[%s986_s23 + $0x40] sm:$0xff]  ;;  %v292_v26 = vadd.f32 %v1046_v21, %v1043_v20  ;;  %v1064_v30 = vld [vmem:[%s986_s23 + $0x48] sm:$0xff]  ;;  %v1073_v33 = vld [vmem:[%s986_s23 + $0x90] sm:$0xff]  ;;  %s816_s8 = scalar_lea.hbm %s815_s6, 200  ;;  %p821_p3 = scmp.lt.s32.totalorder %s815_s6, %s1270_s5 }
  0x31   : > { %v279_v25 = vadd.f32 %v278_v17, %v1036_v16  ;;  %v1060_v27 = vld [vmem:[%s986_s23 + $0xa0] sm:$0xff]  ;;  %v275_v28 = vadd.f32 %v274_v14, %v272_v18  ;;  %v287_v29 = vadd.f32 %v286_v19, %v1033_v15  ;;  %v1067_v31 = vld [vmem:[%s986_s23 + $0xa8] sm:$0xff]  ;;  %v1083_v39 = vld [vmem:[%s986_s23 + $0x98] sm:$0xff]  ;;  %v281_v41 = vsel %vm273_vm0, %v1064_v30, 0.0  ;;  %p817_p6 = scmp.ne.s32.totalorder %s815_s6, %s816_s8  ;;  %p822_p4 = scmp.lt.s32.totalorder %s820_s28, %s816_s8 }
  0x32   : > { %v293_v34 = vadd.f32 %v292_v26, %v1049_v22  ;;  %v1077_v35 = vld [vmem:[%s986_s23 + $0xc0] sm:$0xff]  ;;  %v299_v36 = vadd.f32 %v1067_v31, %v1060_v27  ;;  %v1086_v40 = vld [vmem:[%s986_s23 + $0xb8] sm:$0xff]  ;;  %v295_v45 = vsel %vm273_vm0, %v1083_v39, 0.0  ;;  %v313_v56 = vld [vmem:[%s1266_s1 + $0x10] sm:$0xff] }
  0x33   : > { %276 = vadd.xlane.f32.xlu0 %v275_v28  ;;  %v289_v37 = vadd.f32 %v288_v23, %v287_v29  ;;  %v280_v38 = vadd.f32 %v279_v25, %v1054_v24  ;;  %v302_v44 = vsel %vm273_vm0, %v1077_v35, 0.0  ;;  %v311_v53 = vld [vmem:[%s1266_s1] sm:$0xff]  ;;  %v312_v57 = vld [vmem:[%s1266_s1 + $0x8] sm:$0xff]  ;;  %v314_v62 = vld [vmem:[%s1266_s1 + $0x18] sm:$0xff]  ;;  %p818_p13 = pnand %p817_p6, %p950_p11  ;;  %p823_p5 = por %p822_p4, %p821_p3 }
  0x34   : > { %v300_v42 = vadd.f32 %v299_v36, %v1070_v32  ;;  %v294_v43 = vadd.f32 %v293_v34, %v1073_v33  ;;  %v315_v4 = vld [vmem:[%s1266_s1 + $0x20] sm:$0xff] }
  0x35   : > { %290 = vadd.xlane.f32.xlu1 %v289_v37  ;;  %v282_v47 = vadd.f32 %v281_v41, %v280_v38  ;;  %p819_p2 = pneg %p818_p13 }
  0x36   : > { %v301_v46 = vadd.f32 %v300_v42, %v1086_v40  ;;  %v296_v49 = vadd.f32 %v295_v45, %v294_v43  ;;  %v316_v45 = vld [vmem:[%s1267_s2] sm:$0x1] }
  0x37   : > { %p824_p7 = pnand %p823_p5, %p819_p2 }
  0x38   : > { %v303_v48 = vadd.f32 %v302_v44, %v301_v46 }
  0x3a   : > { %304 = vadd.xlane.f32.xlu2 %v303_v48 }
  0x3b   : > { %283 = vadd.xlane.f32.xlu0 %v282_v47 }
  0x3d   : > { %297 = vadd.xlane.f32.xlu1 %v296_v49 }
  0xa6   : > { %v277_v50 = vpop.xlane.xlu0 %276 }
  0xa7   : > { %v306_v52 = vmul.f32 0.0017361111, %v277_v50 }
  0xa8   : > { %v291_v51 = vpop.xlane.xlu1 %290 }
  0xa9   : > { %v308_v54 = vmul.f32 0.0017361111, %v291_v51  ;;  %v327_v59 = vmul.f32 %v311_v53, %v306_v52 }
  0xab   : > { %v329_v9 = vmul.f32 %v313_v56, %v308_v54  ;;  %v333_v17 = vsel %vm332_vm1, %v327_v59, 0.0 }
  0xad   : > { %v305_v55 = vpop.xlane.xlu2 %304  ;;  %v336_v26 = vsel %vm332_vm1, %v329_v9, 0.0 }
  0xae   : > { %v284_v58 = vpop.xlane.xlu0 %283  ;;  %v310_v61 = vmul.f32 0.0017361111, %v305_v55 }
  0xaf   : > { %v307_v60 = vmul.f32 0.0017361111, %v284_v58 }
  0xb0   : > { %v298_v63 = vpop.xlane.xlu1 %297  ;;  %v331_v23 = vmul.f32 %v315_v4, %v310_v61 }
  0xb1   : > { %v328_v11 = vmul.f32 %v312_v57, %v307_v60  ;;  %v309_v14 = vmul.f32 0.0017361111, %v298_v63 }
  0xb2   : > { %v340_v34 = vsel %vm332_vm1, %v331_v23, 0.0 }
  0xb3   : > { %v334_v18 = vsel %vm332_vm1, %v328_v11, 0.0  ;;  %v330_v19 = vmul.f32 %v314_v62, %v309_v14 }
  0xb4   : > { %v335_v25 = vadd.f32 %v334_v18, %v333_v17 }
  0xb5   : > { %v338_v28 = vsel %vm332_vm1, %v330_v19, 0.0 }
  0xb6   : > { %v337_v29 = vadd.f32 %v336_v26, %v335_v25 }
  0xb8   : > { %v339_v36 = vadd.f32 %v338_v28, %v337_v29 }
  0xba   : > { %v341_v37 = vadd.f32 %v340_v34, %v339_v36  ;;  %v870_v36 = vmov -1.0  }
  0xbc   : > { %v342_v38 = vrot.slane %v341_v37, 4 }
  0xbe   : > { %v343_v41 = vadd.f32 %v342_v38, %v341_v37 }
  0xc0   : > { %v344_v42 = vrot.slane %v343_v41, 2 }
  0xc2   : > { %v345_v43 = vadd.f32 %v344_v42, %v343_v41 }
  0xc4   : > { %v346_v44 = vrot.slane %v345_v43, 1 }
  0xc6   : > { %v347_v46 = vadd.f32 %v346_v44, %v345_v43  ;;  %v319_v44 = vld [vmem:[%s1268_s3 + $0x10] sm:$0xff] }
  0xc8   : > { %v348_v47 = vadd.f32 %v347_v46, %v316_v45  ;;  %v318_v45 = vld [vmem:[%s1268_s3 + $0x8] sm:$0xff]  ;;  %v317_v46 = vld [vmem:[%s1268_s3] sm:$0xff] }
  0xca   : > { %v350_v48 = vmul.f32 0.70710677, %v348_v47  ;;  %v349_v41 = vmul.f32 0.5, %v348_v47 }
  0xcc   : > { %v353_v49 = vand.u32 2147483647, %v350_v48  ;;  %vm351_vm6 = vcmp.ge.f32.partialorder %v350_v48, 0.0 }
  0xcd   : > { %v352_v37 = vsel %vm351_vm6, 1.0, %v870_v36 }
  0xce   : > { %v354_v50 = vmul.f32 0.3275911, %v353_v49  ;;  %v380_v61 = vsub.f32 0.0, %v353_v49 }
  0xd0   : > { %v355_v51 = vadd.f32 1.0, %v354_v50  ;;  %v381_v9 = vmul.f32 %v380_v61, %v353_v49  ;;  %v324_v61 = vld [vmem:[%s1269_s4 + $0x10] sm:$0xff] }
  0xd2   : > { %746 = vrcp.f32 %v355_v51  ;;  %v367_v55 = vand.u32 2147483648, %v355_v51  ;;  %v365_v57 = vand.u32 2147483647, %v355_v51  ;;  %vm361_vm3 = vweird.f32 %v355_v51 }
  0xd3   : > { %v382_v17 = vmul.f32 1.442695, %v381_v9 }
  0xd4   : > { %v368_v59 = vor.u32 1.1754944e-38, %v367_v55  ;;  %vm366_vm5 = vcmp.eq.f32.partialorder %v365_v57, 8.507059e+37  ;;  %v320_v55 = vld [vmem:[%s1268_s3 + $0x18] sm:$0xff] }
  0xd5   : > { %748 = vpow2.f32 %v382_v17 }
  0xd8   : > { %v747_v52 = vpop.eup %746 }
  0xd9   : > { %v357_v53 = vmul.f32 %v747_v52, %v355_v51  ;;  %vm362_vm2 = vweird.f32 %v747_v52 }
  0xda   : > { %vm363_vm4 = vmor %vm361_vm3, %vm362_vm2 }
  0xdb   : > { %v358_v54 = vsub.f32 1.0, %v357_v53  ;;  %v749_v28 = vpop.eup %748 }
  0xdd   : > { %v359_v56 = vmul.f32 %v747_v52, %v358_v54  ;;  %v321_v54 = vld [vmem:[%s1268_s3 + $0x20] sm:$0xff] }
  0xdf   : > { %v360_v58 = vadd.f32 %v747_v52, %v359_v56 }
  0xe1   : > { %v364_v60 = vsel %vm363_vm4, %v747_v52, %v360_v58 }
  0xe2   : > { %v369_v62 = vsel %vm366_vm5, %v368_v59, %v364_v60  ;;  %v871_v60 = vmov 0  }
  0xe3   : > { %v371_v63 = vmul.f32 1.0614054, %v369_v62  ;;  %745 = vset.pattern.permute.xlu0 %v871_v60  ;;  %744 = vset.pattern.permute.xlu2 %v871_v60 }
  0xe4   : > { %743 = vset.pattern.permute.xlu1 %v871_v60 }
  0xe5   : > { %v372_v4 = vadd.f32 -1.4531521, %v371_v63  ;;  %v322_v63 = vld [vmem:[%s1269_s4] sm:$0xff] }
  0xe7   : > { %v373_v11 = vmul.f32 %v372_v4, %v369_v62 }
  0xe9   : > { %v374_v14 = vadd.f32 1.4214138, %v373_v11 }
  0xeb   : > { %v375_v18 = vmul.f32 %v374_v14, %v369_v62 }
  0xed   : > { %v376_v19 = vadd.f32 -0.28449672, %v375_v18 }
  0xef   : > { %v377_v23 = vmul.f32 %v376_v19, %v369_v62 }
  0xf1   : > { %v378_v25 = vadd.f32 0.2548296, %v377_v23 }
  0xf3   : > { %v379_v26 = vmul.f32 %v378_v25, %v369_v62  ;;  %v323_v62 = vld [vmem:[%s1269_s4 + $0x8] sm:$0xff] }
  0xf5   : > { %v384_v29 = vmul.f32 %v749_v28, %v379_v26  ;;  %v326_v26 = vld [vmem:[%s1269_s4 + $0x20] sm:$0xff]  ;;  %v325_v28 = vld [vmem:[%s1269_s4 + $0x18] sm:$0xff] }
  0xf7   : > { %v385_v34 = vsub.f32 1.0, %v384_v29 }
  0xf9   : > { %v386_v38 = vmul.f32 %v385_v34, %v352_v37 }
  0xfb   : > { %v387_v42 = vadd.f32 1.0, %v386_v38 }
  0xfd   : > { %v388_v43 = vmul.f32 %v387_v42, %v349_v41 }
  0xff   : > { %v389_v48 = vperm.slane %v388_v43, 0 }
 0x101   : > { %v392_v49 = vmul.f32 %v389_v48, %v319_v44  ;;  %v391_v50 = vmul.f32 %v389_v48, %v318_v45  ;;  %v390_v51 = vmul.f32 %v389_v48, %v317_v46  ;;  %v394_v56 = vmul.f32 %v389_v48, %v321_v54 }
 0x102   : > { %v393_v57 = vmul.f32 %v389_v48, %v320_v55 }
 0x103   : > { %v401_v47 = vsel %vm332_vm1, %v392_v49, 0.0  ;;  %v398_v52 = vsel %vm332_vm1, %v391_v50, 0.0  ;;  %v395_v53 = vsel %vm332_vm1, %v390_v51, 0.0  ;;  %v407_v58 = vsel %vm332_vm1, %v394_v56, 0.0 }
 0x104   : > { %402 = vadd.xlane.f32.xlu1 %v401_v47  ;;  %399 = vadd.xlane.f32.xlu0 %v398_v52  ;;  %v404_v59 = vsel %vm332_vm1, %v393_v57, 0.0 }
 0x105   : > { %396 = vadd.xlane.f32.xlu2 %v395_v53 }
 0x10c   : > { %408 = vadd.xlane.f32.xlu0 %v407_v58 }
 0x10d   : > { %405 = vadd.xlane.f32.xlu2 %v404_v59 }
 0x177   : > { %v403_v4 = vpop.xlane.xlu1 %402  ;;  %v400_v9 = vpop.xlane.xlu0 %399 }
 0x178   : > { %v412_v11 = vadd.f32 %v403_v4, %v324_v61  ;;  %v411_v14 = vadd.f32 %v400_v9, %v323_v62  ;;  %v397_v17 = vpop.xlane.xlu2 %396 }
 0x179   : > { %v410_v18 = vadd.f32 %v397_v17, %v322_v63 }
 0x17a   : > { %v681_v19 = vmul.f32 -1.442695, %v412_v11  ;;  %v680_v23 = vmul.f32 -1.442695, %v411_v14 }
 0x17b   : > { %v679_v25 = vmul.f32 -1.442695, %v410_v18 }
 0x17c   : > { %750 = vpow2.f32 %v681_v19 }
 0x17d   : > { %752 = vpow2.f32 %v680_v23 }
 0x17e   : > { %754 = vpow2.f32 %v679_v25 }
 0x17f   : > { %v409_v29 = vpop.xlane.xlu0 %408 }
 0x180   : > { %v414_v34 = vadd.f32 %v409_v29, %v326_v26  ;;  %v406_v36 = vpop.xlane.xlu2 %405 }
 0x181   : > { %v413_v37 = vadd.f32 %v406_v36, %v325_v28 }
 0x182   : > { %v751_v38 = vpop.eup %750  ;;  %v683_v41 = vmul.f32 -1.442695, %v414_v34 }
 0x183   : > { %v753_v42 = vpop.eup %752  ;;  %v432_v43 = vadd.f32 1.0, %v751_v38  ;;  %v682_v46 = vmul.f32 -1.442695, %v413_v37 }
 0x184   : > { %v755_v44 = vpop.eup %754  ;;  %v431_v45 = vadd.f32 1.0, %v753_v42  ;;  %756 = vpow2.f32 %v683_v41 }
 0x185   : > { %758 = vrcp.f32 %v432_v43  ;;  %v430_v48 = vadd.f32 1.0, %v755_v44  ;;  %vm470_vm7 = vweird.f32 %v432_v43  ;;  %v474_v57 = vand.u32 2147483647, %v432_v43 }
 0x186   : > { %760 = vrcp.f32 %v431_v45  ;;  %v476_v58 = vand.u32 2147483648, %v432_v43  ;;  %vm455_vm8 = vweird.f32 %v431_v45  ;;  %v459_v62 = vand.u32 2147483647, %v431_v45 }
 0x187   : > { %762 = vrcp.f32 %v430_v48  ;;  %v461_v4 = vand.u32 2147483648, %v431_v45  ;;  %v446_v14 = vand.u32 2147483648, %v430_v48  ;;  %v444_v19 = vand.u32 2147483647, %v430_v48 }
 0x188   : > { %764 = vpow2.f32 %v682_v46  ;;  %vm475_vm13 = vcmp.eq.f32.partialorder %v474_v57, 8.507059e+37  ;;  %v477_v25 = vor.u32 1.1754944e-38, %v476_v58  ;;  %vm440_vm14 = vweird.f32 %v430_v48 }
 0x189   : > { %v462_v29 = vor.u32 1.1754944e-38, %v461_v4  ;;  %vm460_vm1 = vcmp.eq.f32.partialorder %v459_v62, 8.507059e+37  ;;  %v447_v41 = vor.u32 1.1754944e-38, %v446_v14  ;;  %vm445_vm3 = vcmp.eq.f32.partialorder %v444_v19, 8.507059e+37 }
 0x18a   : > { %v757_v49 = vpop.eup %756 }
 0x18b   : > { %v759_v50 = vpop.eup %758  ;;  %v1155_v51 = vadd.f32 1.0, %v757_v49 }
 0x18c   : > { %v761_v47 = vpop.eup %760  ;;  %v466_v52 = vmul.f32 %v759_v50, %v432_v43  ;;  %vm471_vm9 = vweird.f32 %v759_v50 }
 0x18d   : > { %v763_v53 = vpop.eup %762  ;;  %766 = vrcp.f32 %v1155_v51  ;;  %v451_v54 = vmul.f32 %v761_v47, %v431_v45  ;;  %vm456_vm10 = vweird.f32 %v761_v47  ;;  %vm472_vm12 = vmor %vm470_vm7, %vm471_vm9  ;;  %v504_v45 = vand.u32 2147483647, %v1155_v51 }
 0x18e   : > { %v765_v55 = vpop.eup %764  ;;  %v467_v56 = vsub.f32 1.0, %v466_v52  ;;  %v436_v59 = vmul.f32 %v763_v53, %v430_v48  ;;  %vm441_vm11 = vweird.f32 %v763_v53  ;;  %vm457_vm15 = vmor %vm455_vm8, %vm456_vm10  ;;  %v506_v49 = vand.u32 2147483648, %v1155_v51 }
 0x18f   : > { %v1158_v60 = vadd.f32 1.0, %v765_v55  ;;  %v452_v61 = vsub.f32 1.0, %v451_v54  ;;  %vm442_vm2 = vmor %vm440_vm14, %vm441_vm11  ;;  %vm500_vm5 = vweird.f32 %v1155_v51  ;;  %vm505_vm7 = vcmp.eq.f32.partialorder %v504_v45, 8.507059e+37 }
 0x190   : > { %v468_v63 = vmul.f32 %v759_v50, %v467_v56  ;;  %v437_v9 = vsub.f32 1.0, %v436_v59 }
 0x191   : > { %768 = vrcp.f32 %v1158_v60  ;;  %v453_v11 = vmul.f32 %v761_v47, %v452_v61  ;;  %v491_v55 = vand.u32 2147483648, %v1158_v60  ;;  %v489_v58 = vand.u32 2147483647, %v1158_v60 }
 0x192   : > { %v469_v17 = vadd.f32 %v759_v50, %v468_v63  ;;  %v438_v18 = vmul.f32 %v763_v53, %v437_v9  ;;  %vm485_vm9 = vweird.f32 %v1158_v60 }
 0x193   : > { %v767_v23 = vpop.eup %766  ;;  %v454_v26 = vadd.f32 %v761_v47, %v453_v11  ;;  %v492_v62 = vor.u32 1.1754944e-38, %v491_v55  ;;  %vm490_vm11 = vcmp.eq.f32.partialorder %v489_v58, 8.507059e+37 }
 0x194   : > { %v473_v28 = vsel %vm472_vm12, %v759_v50, %v469_v17  ;;  %v439_v34 = vadd.f32 %v763_v53, %v438_v18  ;;  %v496_v36 = vmul.f32 %v767_v23, %v1155_v51  ;;  %vm501_vm4 = vweird.f32 %v767_v23 }
 0x195   : > { %v478_v37 = vsel %vm475_vm13, %v477_v25, %v473_v28  ;;  %v458_v38 = vsel %vm457_vm15, %v761_v47, %v454_v26  ;;  %vm502_vm6 = vmor %vm500_vm5, %vm501_vm4 }
 0x196   : > { %522 = vperm.xlu0 %745, %v478_v37   ;;  %v463_v42 = vsel %vm460_vm1, %v462_v29, %v458_v38  ;;  %v443_v43 = vsel %vm442_vm2, %v763_v53, %v439_v34  ;;  %v497_v44 = vsub.f32 1.0, %v496_v36  ;;  %v507_v53 = vor.u32 1.1754944e-38, %v506_v49 }
 0x197   : > { %v769_v46 = vpop.eup %768  ;;  %517 = vperm.xlu2 %744, %v463_v42   ;;  %v448_v48 = vsel %vm445_vm3, %v447_v41, %v443_v43 }
 0x198   : > { %512 = vperm.xlu1 %743, %v448_v48   ;;  %v498_v50 = vmul.f32 %v767_v23, %v497_v44  ;;  %v481_v47 = vmul.f32 %v769_v46, %v1158_v60  ;;  %vm486_vm8 = vweird.f32 %v769_v46 }
 0x199   : > { %vm487_vm10 = vmor %vm485_vm9, %vm486_vm8 }
 0x19a   : > { %v499_v52 = vadd.f32 %v767_v23, %v498_v50  ;;  %v482_v54 = vsub.f32 1.0, %v481_v47 }
 0x19c   : > { %v503_v56 = vsel %vm502_vm6, %v767_v23, %v499_v52  ;;  %v483_v57 = vmul.f32 %v769_v46, %v482_v54 }
 0x19d   : > { %v508_v59 = vsel %vm505_vm7, %v507_v53, %v503_v56 }
 0x19e   : > { %v484_v61 = vadd.f32 %v769_v46, %v483_v57 }
 0x1a0   : > { %532 = vperm.xlu1 %743, %v508_v59   ;;  %v488_v51 = vsel %vm487_vm10, %v769_v46, %v484_v61 }
 0x1a1   : > { %v493_v63 = vsel %vm490_vm11, %v492_v62, %v488_v51 }
 0x1a2   : > { %527 = vperm.xlu2 %744, %v493_v63  }
 0x1f1   : > { %v518_v4 = vpop.permute.xlu2 %517 }
 0x1f2   : > { %v540_v9 = vmul.f32 %v518_v4, %v1025_v12  ;;  %v541_v11 = vmul.f32 %v518_v4, %v1028_v13  ;;  %v542_v14 = vmul.f32 %v518_v4, %v1036_v16  ;;  %v543_v17 = vmul.f32 %v518_v4, %v1054_v24 }
 0x1f3   : > { %v544_v18 = vmul.f32 %v518_v4, %v1064_v30 }
 0x1f4   : > { %565 = vst [vmem:[%s1179_s16 + $0x28] sm:$0xff] %v540_v9 }
 0x1f5   : > { %566 = vst [vmem:[%s1179_s16 + $0x30] sm:$0xff] %v541_v11 }
 0x1f6   : > { %567 = vst [vmem:[%s1179_s16 + $0x38] sm:$0xff] %v542_v14 }
 0x1f7   : > { %568 = vst [vmem:[%s1179_s16 + $0x40] sm:$0xff] %v543_v17 }
 0x1f8   : > { %569 = vst.msk [vmem:[%s1179_s16 + $0x48] sm:$0xff] %vm273_vm0, %v544_v18 }
 0x1fc   : > { %v528_v12 = vpop.permute.xlu2 %527 }
 0x1fd   : > { %v550_v13 = vmul.f32 %v528_v12, %v1043_v20  ;;  %v551_v16 = vmul.f32 %v528_v12, %v1046_v21  ;;  %v552_v24 = vmul.f32 %v528_v12, %v1049_v22  ;;  %v553_v30 = vmul.f32 %v528_v12, %v1073_v33 }
 0x1fe   : > { %v554_v60 = vmul.f32 %v528_v12, %v1083_v39 }
 0x1ff   : > { %575 = vst [vmem:[%s1179_s16 + $0x78] sm:$0xff] %v550_v13 }
 0x200   : > { %576 = vst [vmem:[%s1179_s16 + $0x80] sm:$0xff] %v551_v16 }
 0x201   : > { %577 = vst [vmem:[%s1179_s16 + $0x88] sm:$0xff] %v552_v24 }
 0x202   : > { %578 = vst [vmem:[%s1179_s16 + $0x90] sm:$0xff] %v553_v30 }
 0x203   : > { %579 = vst.msk [vmem:[%s1179_s16 + $0x98] sm:$0xff] %vm273_vm0, %v554_v60 }
 0x208   : > { %v523_v20 = vpop.permute.xlu0 %522 }
 0x209   : > { %v545_v21 = vmul.f32 %v523_v20, %v1007_v5  ;;  %v546_v22 = vmul.f32 %v523_v20, %v1013_v7  ;;  %v547_v33 = vmul.f32 %v523_v20, %v1016_v8  ;;  %v548_v39 = vmul.f32 %v523_v20, %v1033_v15 }
 0x20a   : > { %v513_v19 = vpop.permute.xlu1 %512  ;;  %v549_v23 = vmul.f32 %v523_v20, %v1020_v10 }
 0x20b   : > { %570 = vst [vmem:[%s1179_s16 + $0x50] sm:$0xff] %v545_v21  ;;  %v535_v25 = vmul.f32 %v513_v19, %v993_v0  ;;  %v536_v5 = vmul.f32 %v513_v19, %v996_v1  ;;  %v537_v7 = vmul.f32 %v513_v19, %v999_v2  ;;  %v538_v8 = vmul.f32 %v513_v19, %v1010_v6 }
 0x20c   : > { %571 = vst [vmem:[%s1179_s16 + $0x58] sm:$0xff] %v546_v22  ;;  %v539_v10 = vmul.f32 %v513_v19, %v1002_v3 }
 0x20d   : > { %572 = vst [vmem:[%s1179_s16 + $0x60] sm:$0xff] %v547_v33 }
 0x20e   : > { %573 = vst [vmem:[%s1179_s16 + $0x68] sm:$0xff] %v548_v39 }
 0x20f   : > { %574 = vst.msk [vmem:[%s1179_s16 + $0x70] sm:$0xff] %vm273_vm0, %v549_v23 }
 0x210   : > { %560 = vst [vmem:[%s1179_s16] sm:$0xff] %v535_v25 }
 0x211   : > { %561 = vst [vmem:[%s1179_s16 + $0x8] sm:$0xff] %v536_v5 }
 0x212   : > { %562 = vst [vmem:[%s1179_s16 + $0x10] sm:$0xff] %v537_v7  ;;  %v533_v0 = vpop.permute.xlu1 %532 }
 0x213   : > { %563 = vst [vmem:[%s1179_s16 + $0x18] sm:$0xff] %v538_v8  ;;  %v555_v1 = vmul.f32 %v533_v0, %v1060_v27  ;;  %v556_v2 = vmul.f32 %v533_v0, %v1067_v31  ;;  %v557_v3 = vmul.f32 %v533_v0, %v1070_v32  ;;  %v558_v6 = vmul.f32 %v533_v0, %v1086_v40 }
 0x214   : > { %564 = vst.msk [vmem:[%s1179_s16 + $0x20] sm:$0xff] %vm273_vm0, %v539_v10  ;;  %v559_v15 = vmul.f32 %v533_v0, %v1077_v35 }
 0x215   : > { %580 = vst [vmem:[%s1179_s16 + $0xa0] sm:$0xff] %v555_v1 }
 0x216   : > { %581 = vst [vmem:[%s1179_s16 + $0xa8] sm:$0xff] %v556_v2 }
 0x217   : > { %582 = vst [vmem:[%s1179_s16 + $0xb0] sm:$0xff] %v557_v3 }
 0x218   : > { %583 = vst [vmem:[%s1179_s16 + $0xb8] sm:$0xff] %v558_v6 }
 0x219   : > { %584 = vst.msk [vmem:[%s1179_s16 + $0xc0] sm:$0xff] %vm273_vm0, %v559_v15 }
 0x21a   : > { %827 = shalt.err (!%p824_p7)
}
 0x21b   : > { %s872_s11 = smov 640   ;;  %s873_s15 = smov 40  }
 0x21c   : > { %693 = dma.vmem_to_hbm [thread:$0]  (%p950_p11), %s599_s22, 3200, %s601_s9, %s586_s10, %s872_s11, %s872_s11, %s873_s15  }
 0x21d PF: > { %s615_s16 = sand.u32 1, %s854_s18   ;;  %p700_p8 = pnand %p676_p9, %p954_p12 }
 0x21e   : > { %s616_s14 = scalar_lea.sflag [#allocation4], %s615_s16 }
 0x21f   : > { %p701_p10 = pneg %p700_p8 }
 0x221   : > { %849 = dma.done.wait (%p701_p10), %s616_s14, 3200  }
 0x222   : > { %851 = vsyncadd (%p701_p10), %s616_s14, 4294964096  ;;  %p18_p0 = scmp.ge.s32.totalorder %s929_s24, 4   ;;  %s1275_s18 = smov %s858_s19 }
 0x223   : > { %s1276_s19 = smov %s862_s20  ;;  %s1277_s20 = smov %s941_s27 }
 0x224   : > { %s1278_s21 = smov %s929_s24  ;;  %20 = sbr.rel (!%p18_p0) target bundleno = 5 (0x5), region = 85 }
 0x229   :  { %622 = vsyncpa [#allocation3], 1 }
 0x22a   :  { %624 = vsyncpa [#allocation3 + $0x1], 1 }
 0x22b   :  { %625 = vsyncpa [#allocation4], 1 }
 0x22c   :  { %627 = vsyncpa [#allocation4 + $0x1], 1 }

</bundles_post_ra>
